<compile_context>
chip_gen: v5e
topology: v5e:2x2
jax: 0.10.0
libtpu: 0.0.40
codegen_flags: <defaults>
</compile_context>

<pallas_src>
import functools

import jax
import jax.numpy as jnp
from jax.experimental import pallas as pl
from jax.experimental.pallas import tpu as pltpu


# ----------------------------------------------------------------------------
# Kernel: one (row-tile, ff-block) grid step.
#   h    = relu(x_tile @ W1[:, f] + b1[f])          (tm, tff)
#   acc += h @ W2[f, :]                              (tm, D), f32 scratch
#   at last f:  out = acc [* 1/(1-p)] + b2
# ----------------------------------------------------------------------------
def _ffn_kernel(seed_ref, x_ref, w1_ref, b1_ref, w2_ref, b2_ref, o_ref, acc_ref,
                *, dropout_ratio, training):
    f = pl.program_id(1)
    n_f = pl.num_programs(1)

    @pl.when(f == 0)
    def _():
        acc_ref[...] = jnp.zeros_like(acc_ref)

    # First linear (MXU, f32 accumulation) + bias + ReLU.
    h = jnp.dot(x_ref[...], w1_ref[...], preferred_element_type=jnp.float32)
    h = jnp.maximum(h + b1_ref[...].astype(jnp.float32), 0.0)

    # Inverted dropout (training only; Python-static branch so the TPU PRNG
    # primitives are never traced in eval mode). Compare+select only: the
    # 1/(1-p) rescale is folded into the final writeback below.
    if training and dropout_ratio > 0.0:
        i = pl.program_id(0)
        mixed = seed_ref[0] ^ (i * jnp.int32(1000003)) ^ (f * jnp.int32(7919))
        pltpu.prng_seed(mixed)
        bits = pltpu.bitcast(pltpu.prng_random_bits(h.shape), jnp.uint32)
        thresh = jnp.uint32(min(int(dropout_ratio * (1 << 32)), (1 << 32) - 1))
        h = jnp.where(bits >= thresh, h, jnp.float32(0.0))

    # Second linear: accumulate this FF block's contribution.
    acc_ref[...] += jnp.dot(h.astype(w2_ref.dtype), w2_ref[...],
                            preferred_element_type=jnp.float32)

    @pl.when(f == n_f - 1)
    def _():
        acc = acc_ref[...]
        if training and dropout_ratio > 0.0:
            acc = acc * jnp.float32(1.0 / (1.0 - dropout_ratio))
        o_ref[...] = (acc + b2_ref[...].astype(jnp.float32)).astype(o_ref.dtype)


# ----------------------------------------------------------------------------
# Tile-size helpers
# ----------------------------------------------------------------------------
def _largest_divisor_tile(n, max_tile, multiple):
    """Largest divisor of n that is a multiple of `multiple` and <= max_tile."""
    t = (max_tile // multiple) * multiple
    while t >= multiple:
        if n % t == 0:
            return t
        t -= multiple
    return None


# ----------------------------------------------------------------------------
# Wrapper
# ----------------------------------------------------------------------------
def position_wise_feed_forward(x, w1, b1, w2, b2, *,
                               dropout_ratio=0.0, training=False, seed=0,
                               block_rows=512, block_ff=1024,
                               compute_dtype=None):
    """Forward pass of `_PositionWiseFeedForward`.

    x  : [B, S, D]
    w1 : [D, FF],  b1 : [FF]
    w2 : [FF, D],  b2 : [D]
    compute_dtype: optionally cast x/W1/W2 (e.g. jnp.bfloat16) for bf16 MXU.
    """
    B, S, D = x.shape
    FF = w1.shape[1]
    assert w1.shape == (D, FF) and b1.shape == (FF,)
    assert w2.shape == (FF, D) and b2.shape == (D,)

    out_dtype = x.dtype
    M = B * S
    x2 = x.reshape(M, D)

    if compute_dtype is not None:
        x2 = x2.astype(compute_dtype)
        w1 = w1.astype(compute_dtype)
        w2 = w2.astype(compute_dtype)

    # ---- Row tile: multiple-of-8 divisor of M (no pad/slice round trip). ----
    if M <= block_rows:
        tm, m_pad = M, M
    else:
        tm = _largest_divisor_tile(M, block_rows, 8)
        if tm is not None:
            m_pad = M
        else:
            # TODO(synk): handle the ragged last row tile with an in-kernel
            # masked store instead of this pad/slice fallback.
            tm = block_rows
            m_pad = ((M + tm - 1) // tm) * tm
            x2 = jnp.pad(x2, ((0, m_pad - M), (0, 0)))

    # ---- FF (hidden) tile: multiple-of-128 divisor of FF, else full FF. ----
    if FF <= block_ff or FF % 128 != 0:
        tff = FF
    else:
        tff = _largest_divisor_tile(FF, block_ff, 128) or FF

    n_i = m_pad // tm
    n_f = FF // tff

    # ---- VMEM budget: actual tile footprint + headroom (fits v7x 64 MiB). ----
    xb = jnp.dtype(x2.dtype).itemsize
    wb = jnp.dtype(w1.dtype).itemsize
    est = (2 * tm * D * xb                      # x row tile (double-buffered)
           + 2 * tm * D * jnp.dtype(out_dtype).itemsize   # out tile
           + 2 * (D * tff + tff) * wb           # W1 block + b1 block
           + 2 * tff * D * wb                   # W2 block
           + 2 * D * 4                          # b2
           + tm * D * 4                         # f32 accumulator scratch
           + 2 * tm * tff * 4)                  # h intermediate (+ PRNG bits)
    vmem_limit = int(min(max(est * 3 // 2, 8 * 1024 * 1024), 64 * 1024 * 1024))

    # 2-D biases for clean TPU layout / broadcasting inside the kernel.
    b1_2d = b1.reshape(1, FF).astype(jnp.float32)
    b2_2d = b2.reshape(1, D).astype(jnp.float32)

    kernel = functools.partial(
        _ffn_kernel,
        dropout_ratio=float(dropout_ratio),
        training=bool(training),
    )

    cost = pl.CostEstimate(
        flops=4 * M * D * FF,
        transcendentals=0,
        bytes_accessed=(x2.size * xb + w1.size * wb + w2.size * wb
                        + (FF + D) * 4 + m_pad * D * jnp.dtype(out_dtype).itemsize),
    )

    out2 = pl.pallas_call(
        kernel,
        out_shape=jax.ShapeDtypeStruct((m_pad, D), out_dtype),
        grid_spec=pltpu.PrefetchScalarGridSpec(
            num_scalar_prefetch=1,                 # dropout seed lands in SMEM
            grid=(n_i, n_f),                       # rows (parallel), FF (reduction, innermost)
            in_specs=[
                pl.BlockSpec((tm, D),  lambda i, f, seed: (i, 0)),   # x rows (resident over f)
                pl.BlockSpec((D, tff), lambda i, f, seed: (0, f)),   # W1 column block
                pl.BlockSpec((1, tff), lambda i, f, seed: (0, f)),   # b1 block
                pl.BlockSpec((tff, D), lambda i, f, seed: (f, 0)),   # W2 row block
                pl.BlockSpec((1, D),   lambda i, f, seed: (0, 0)),   # b2 (resident)
            ],
            out_specs=pl.BlockSpec((tm, D), lambda i, f, seed: (i, 0)),
            scratch_shapes=[pltpu.VMEM((tm, D), jnp.float32)],       # accumulator
        ),
        compiler_params=pltpu.CompilerParams(
            dimension_semantics=("parallel", "arbitrary"),
            vmem_limit_bytes=vmem_limit,
        ),
        cost_estimate=cost,
    )(jnp.array([seed], dtype=jnp.int32), x2, w1, b1_2d, w2, b2_2d)

    if m_pad != M:
        out2 = out2[:M]
    return out2.reshape(B, S, D)


# ----------------------------------------------------------------------------
# Demo / self-check
# ----------------------------------------------------------------------------
if __name__ == "__main__":
    # Module hyper-parameters (small, consistent with the forward pass).
    dimensions = 32
    feed_forward_dimensions = 64
    dropout_ratio = 0.1

    B, S, D, FF = 2, 8, dimensions, feed_forward_dimensions

    key = jax.random.PRNGKey(0)
    kx, k1, k2, k3, k4 = jax.random.split(key, 5)
    x = jax.random.normal(kx, (B, S, D), dtype=jnp.float32)
    w1 = jax.random.normal(k1, (D, FF), dtype=jnp.float32) * 0.1
    b1 = jax.random.normal(k2, (FF,), dtype=jnp.float32) * 0.1
    w2 = jax.random.normal(k3, (FF, D), dtype=jnp.float32) * 0.1
    b2 = jax.random.normal(k4, (D,), dtype=jnp.float32) * 0.1

    # Eval mode (dropout is identity) -> deterministic, verifiable output.
    out = position_wise_feed_forward(
        x, w1, b1, w2, b2, dropout_ratio=dropout_ratio, training=False)
    out = jax.block_until_ready(out)

    # Pure-JAX reference of the nn.Sequential forward (eval mode).
    ref = jnp.maximum(x @ w1 + b1, 0.0) @ w2 + b2
    assert out.shape == (B, S, D)
    assert jnp.allclose(out, ref, atol=1e-5, rtol=1e-5), \
        float(jnp.max(jnp.abs(out - ref)))

    print("KERNEL_OK")
</pallas_src>

<mosaic_0001>
module attributes {stable_mosaic.version = 11 : i64} {
  func.func @_ffn_kernel(%arg0: i32, %arg1: i32, %arg2: memref<1xi32, #tpu.memory_space<smem>>, %arg3: memref<16x32xf32, #tpu.memory_space<vmem>>, %arg4: memref<32x64xf32, #tpu.memory_space<vmem>>, %arg5: memref<1x64xf32, #tpu.memory_space<vmem>>, %arg6: memref<64x32xf32, #tpu.memory_space<vmem>>, %arg7: memref<1x32xf32, #tpu.memory_space<vmem>>, %arg8: memref<16x32xf32, #tpu.memory_space<vmem>>, %arg9: memref<16x32xf32, #tpu.memory_space<vmem>>) attributes {dimension_semantics = [#tpu.dimension_semantics<parallel>, #tpu.dimension_semantics<arbitrary>], iteration_bounds = array<i64: 1, 1>, scalar_prefetch = 1 : i64, scratch_operands = 1 : i64, tpu.core_type = #tpu.core_type<tc>, window_params = [{transform_indices = @transform_0, window_bounds = array<i64: 16, 32>}, {transform_indices = @transform_1, window_bounds = array<i64: 32, 64>}, {transform_indices = @transform_2, window_bounds = array<i64: 1, 64>}, {transform_indices = @transform_3, window_bounds = array<i64: 64, 32>}, {pipeline_mode = #tpu.pipeline_mode<synchronous>, transform_indices = @transform_4, window_bounds = array<i64: 1, 32>}, {transform_indices = @transform_5, window_bounds = array<i64: 16, 32>}]} {
    %c0_i32 = arith.constant 0 : i32
    %0 = arith.cmpi eq, %arg1, %c0_i32 : i32
    %1 = arith.extui %0 : i1 to i32
    %c0_i32_0 = arith.constant 0 : i32
    %2 = arith.cmpi ne, %1, %c0_i32_0 : i32
    scf.if %2 {
      %cst_16 = arith.constant 0.000000e+00 : f32
      %19 = vector.broadcast %cst_16 : f32 to vector<16x32xf32>
      %c0_17 = arith.constant 0 : index
      %c0_18 = arith.constant 0 : index
      %20 = vector.load %arg9[%c0_17, %c0_18] : memref<16x32xf32, #tpu.memory_space<vmem>>, vector<16x32xf32>
      tpu.vector_store %arg9[%c0_17, %c0_18], %19 {strides = array<i32>} : memref<16x32xf32, #tpu.memory_space<vmem>>, vector<16x32xf32>,
    } else {
    }
    %c0 = arith.constant 0 : index
    %c0_1 = arith.constant 0 : index
    %3 = vector.load %arg3[%c0, %c0_1] : memref<16x32xf32, #tpu.memory_space<vmem>>, vector<16x32xf32>
    %c0_2 = arith.constant 0 : index
    %c0_3 = arith.constant 0 : index
    %4 = vector.load %arg4[%c0_2, %c0_3] : memref<32x64xf32, #tpu.memory_space<vmem>>, vector<32x64xf32>
    %cst = arith.constant dense<0.000000e+00> : vector<16x64xf32>
    %5 = tpu.matmul %3, %4, %cst {dimension_numbers = #tpu.dot_dimension_numbers<[1], [0], [0], [1], [0, 0, 1, 1], [], []>} : vector<16x32xf32>, vector<32x64xf32>, vector<16x64xf32> -> vector<16x64xf32>
    %c0_4 = arith.constant 0 : index
    %c0_5 = arith.constant 0 : index
    %6 = vector.load %arg5[%c0_4, %c0_5] : memref<1x64xf32, #tpu.memory_space<vmem>>, vector<1x64xf32>
    %7 = vector.broadcast %6 : vector<1x64xf32> to vector<16x64xf32>
    %8 = arith.addf %5, %7 : vector<16x64xf32>
    %cst_6 = arith.constant 0.000000e+00 : f32
    %9 = vector.broadcast %cst_6 : f32 to vector<16x64xf32>
    %10 = arith.maximumf %8, %9 : vector<16x64xf32>
    %c0_7 = arith.constant 0 : index
    %c0_8 = arith.constant 0 : index
    %11 = vector.load %arg9[%c0_7, %c0_8] : memref<16x32xf32, #tpu.memory_space<vmem>>, vector<16x32xf32>
    %c0_9 = arith.constant 0 : index
    %c0_10 = arith.constant 0 : index
    %12 = vector.load %arg6[%c0_9, %c0_10] : memref<64x32xf32, #tpu.memory_space<vmem>>, vector<64x32xf32>
    %cst_11 = arith.constant dense<0.000000e+00> : vector<16x32xf32>
    %13 = tpu.matmul %10, %12, %cst_11 {dimension_numbers = #tpu.dot_dimension_numbers<[1], [0], [0], [1], [0, 0, 1, 1], [], []>} : vector<16x64xf32>, vector<64x32xf32>, vector<16x32xf32> -> vector<16x32xf32>
    %14 = arith.addf %11, %13 : vector<16x32xf32>
    %c0_12 = arith.constant 0 : index
    %c0_13 = arith.constant 0 : index
    %15 = vector.load %arg9[%c0_12, %c0_13] : memref<16x32xf32, #tpu.memory_space<vmem>>, vector<16x32xf32>
    tpu.vector_store %arg9[%c0_12, %c0_13], %14 {strides = array<i32>} : memref<16x32xf32, #tpu.memory_space<vmem>>, vector<16x32xf32>,
    %c0_i32_14 = arith.constant 0 : i32
    %16 = arith.cmpi eq, %arg1, %c0_i32_14 : i32
    %17 = arith.extui %16 : i1 to i32
    %c0_i32_15 = arith.constant 0 : i32
    %18 = arith.cmpi ne, %17, %c0_i32_15 : i32
    scf.if %18 {
      %c0_16 = arith.constant 0 : index
      %c0_17 = arith.constant 0 : index
      %19 = vector.load %arg9[%c0_16, %c0_17] : memref<16x32xf32, #tpu.memory_space<vmem>>, vector<16x32xf32>
      %c0_18 = arith.constant 0 : index
      %c0_19 = arith.constant 0 : index
      %20 = vector.load %arg7[%c0_18, %c0_19] : memref<1x32xf32, #tpu.memory_space<vmem>>, vector<1x32xf32>
      %21 = vector.broadcast %20 : vector<1x32xf32> to vector<16x32xf32>
      %22 = arith.addf %19, %21 : vector<16x32xf32>
      %c0_20 = arith.constant 0 : index
      %c0_21 = arith.constant 0 : index
      %23 = vector.load %arg8[%c0_20, %c0_21] : memref<16x32xf32, #tpu.memory_space<vmem>>, vector<16x32xf32>
      tpu.vector_store %arg8[%c0_20, %c0_21], %22 {strides = array<i32>} : memref<16x32xf32, #tpu.memory_space<vmem>>, vector<16x32xf32>,
    } else {
    }
    return
  }
  func.func @transform_0(%arg0: i32, %arg1: i32, %arg2: memref<1xi32, #tpu.memory_space<smem>>) -> (i32, i32) {
    %c0_i32 = arith.constant 0 : i32
    %c0_i32_0 = arith.constant 0 : i32
    return %arg0, %c0_i32 : i32, i32
  }
  func.func @transform_1(%arg0: i32, %arg1: i32, %arg2: memref<1xi32, #tpu.memory_space<smem>>) -> (i32, i32) {
    %c0_i32 = arith.constant 0 : i32
    %c0_i32_0 = arith.constant 0 : i32
    return %c0_i32, %arg1 : i32, i32
  }
  func.func @transform_2(%arg0: i32, %arg1: i32, %arg2: memref<1xi32, #tpu.memory_space<smem>>) -> (i32, i32) {
    %c0_i32 = arith.constant 0 : i32
    %c0_i32_0 = arith.constant 0 : i32
    return %c0_i32, %arg1 : i32, i32
  }
  func.func @transform_3(%arg0: i32, %arg1: i32, %arg2: memref<1xi32, #tpu.memory_space<smem>>) -> (i32, i32) {
    %c0_i32 = arith.constant 0 : i32
    %c0_i32_0 = arith.constant 0 : i32
    return %arg1, %c0_i32 : i32, i32
  }
  func.func @transform_4(%arg0: i32, %arg1: i32, %arg2: memref<1xi32, #tpu.memory_space<smem>>) -> (i32, i32) {
    %c0_i32 = arith.constant 0 : i32
    %c0_i32_0 = arith.constant 0 : i32
    %c0_i32_1 = arith.constant 0 : i32
    return %c0_i32, %c0_i32_0 : i32, i32
  }
  func.func @transform_5(%arg0: i32, %arg1: i32, %arg2: memref<1xi32, #tpu.memory_space<smem>>) -> (i32, i32) {
    %c0_i32 = arith.constant 0 : i32
    %c0_i32_0 = arith.constant 0 : i32
    return %arg0, %c0_i32 : i32, i32
  }
}

</mosaic_0001>

<bundles_post_ra>
// kernel: tpu_custom_call.1
= control target key start
LH: loop header
LB: loop body
LE: loop exit
PB: predicated region body
PF: predicated region fallthrough
CT: control target
= control target key end

     0   :  { %s293_s0 = inlined_call_operand.<no memory space> [shape: s32[1], index: 0, kind: input, shape index: {}]   ;;  %s294_s1 = inlined_call_operand.vmem [shape: f32[16,32], index: 1, kind: input, shape index: {}]   ;;  %s295_s2 = inlined_call_operand.vmem [shape: f32[32,64], index: 2, kind: input, shape index: {}]   ;;  %s296_s3 = inlined_call_operand.vmem [shape: f32[1,64], index: 3, kind: input, shape index: {}]   ;;  %s297_s4 = inlined_call_operand.vmem [shape: f32[64,32], index: 4, kind: input, shape index: {}]   ;;  %s298_s5 = inlined_call_operand.vmem [shape: f32[1,32], index: 5, kind: input, shape index: {}]   ;;  %s299_s6 = inlined_call_operand.hbm [shape: f32[16,32], index: 6, kind: output, shape index: {}]  }
   0x1   :  { %v35_v0 = vld [vmem:[%s295_s2 + $0x18] sm:$0xff]  ;;  %v34_v1 = vld [vmem:[%s295_s2 + $0x10] sm:$0xff]  ;;  %v33_v2 = vld [vmem:[%s295_s2 + $0x8] sm:$0xff] }
   0x2   :  { %151 = vmatpush.msra.mxu3 %v35_v0  ;;  %59 = vmatpush.msra.mxu0 %v35_v0  ;;  %v81_v3 = vld [vmem:[%s297_s4 + $0x38] sm:$0xff]  ;;  %v80_v4 = vld [vmem:[%s297_s4 + $0x30] sm:$0xff]  ;;  %v32_v5 = vld [vmem:[%s295_s2] sm:$0xff] }
   0x3   :  { %155 = vmatpush.msra.mxu2 %v81_v3  ;;  %97 = vmatpush.msra.mxu1 %v81_v3 }
   0x4   :  { %152 = vmatpush.msra.mxu3 %v34_v1  ;;  %60 = vmatpush.msra.mxu0 %v34_v1 }
   0x5   :  { %12 = vsyncpa [#allocation6], 0  ;;  %vm27_vm0 = vcmask 261120   ;;  %v31_v6 = vld [vmem:[%s294_s1 + $0x8] sm:$0xff]  ;;  %v30_v7 = vld [vmem:[%s294_s1] sm:$0xff]  ;;  %156 = vmatpush.msra.mxu2 %v80_v4  ;;  %98 = vmatpush.msra.mxu1 %v80_v4  ;;  %v195_v14 = vmov 0.0  }
   0x6   :  { %153 = vmatpush.msra.mxu3 %v33_v2  ;;  %61 = vmatpush.msra.mxu0 %v33_v2  ;;  %v79_v8 = vld [vmem:[%s297_s4 + $0x28] sm:$0xff]  ;;  %v78_v9 = vld [vmem:[%s297_s4 + $0x20] sm:$0xff]  ;;  %v77_v10 = vld [vmem:[%s297_s4 + $0x18] sm:$0xff]  ;;  %28 = vst.msk [vmem:[#allocation2] sm:$0xff] %vm27_vm0, %v195_v14  ;;  %vm82_vm1 = vcmask 523264   ;;  %s135_s27 = sshll.u32 %s299_s6, 4  ;;  %s136_s27 = int_to_ptr.hbm [resolvable:$true] %s135_s27 }
   0x7   :  { %157 = vmatpush.msra.mxu2 %v79_v8  ;;  %99 = vmatpush.msra.mxu1 %v79_v8  ;;  %v76_v11 = vld [vmem:[%s297_s4 + $0x10] sm:$0xff]  ;;  %v75_v12 = vld [vmem:[%s297_s4 + $0x8] sm:$0xff]  ;;  %v74_v13 = vld [vmem:[%s297_s4] sm:$0xff]  ;;  %29 = vst.msk [vmem:[#allocation2 + $0x8] sm:$0xff] %vm27_vm0, %v195_v14  ;;  %s198_s28 = smov 8  }
   0x8   :  { %154 = vmatpush.msra.mxu3 %v32_v5  ;;  %62 = vmatpush.msra.mxu0 %v32_v5  ;;  %v167_v15 = vld [vmem:[%s296_s3] ss:$0 sm:$0xff]  ;;  %s196_s3 = smov [#allocation5]  }
   0x9   :  { %148 = vmatmul.msk.f32.vlgmr.msra.gmra.mxu3 %vm27_vm0, %v31_v6  ;;  %147 = vmatmul.msk.f32.vlgmr.msra.gmra.mxu0 %vm27_vm0, %v30_v7  ;;  %v168_v25 = vld [vmem:[%s298_s5] ss:$0 sm:$0xff]  ;;  %s133_s24 = sshll.u32 %s196_s3, 4  ;;  %s197_s5 = smov 128   ;;  %s134_s24 = int_to_ptr.vmem [resolvable:$true] %s133_s24 }
   0xa   :  { %158 = vmatpush.msra.mxu2 %v78_v9  ;;  %100 = vmatpush.msra.mxu1 %v78_v9 }
   0xc   :  { %159 = vmatpush.msra.mxu2 %v77_v10  ;;  %101 = vmatpush.msra.mxu1 %v77_v10 }
   0xd   :  { %v72_v22 = vld [vmem:[#allocation2] sm:$0xff] }
   0xe   :  { %160 = vmatpush.msra.mxu2 %v76_v11  ;;  %102 = vmatpush.msra.mxu1 %v76_v11  ;;  %v73_v26 = vld [vmem:[#allocation2 + $0x8] sm:$0xff] }
  0x10   :  { %161 = vmatpush.msra.mxu2 %v75_v12  ;;  %103 = vmatpush.msra.mxu1 %v75_v12 }
  0x12   :  { %162 = vmatpush.msra.mxu2 %v74_v13  ;;  %104 = vmatpush.msra.mxu1 %v74_v13 }
  0x86   :  { %v64_v16 = vpop.f32.mrf.mxu0 }
  0x87   :  { %v65_v17 = vadd.f32 %v167_v15, %v64_v16 }
  0x89   :  { %v70_v18 = vmax.f32 %v65_v17, 0.0 }
  0x8b   :  { %149 = vmatmul.msk.f32.vlgmr.msra.gmra.mxu1 %vm82_vm1, %v70_v18 }
  0x8c   :  { %v67_v19 = vpop.f32.mrf.mxu3 }
  0x8d   :  { %v68_v20 = vadd.f32 %v167_v15, %v67_v19 }
  0x8f   :  { %v71_v21 = vmax.f32 %v68_v20, 0.0 }
  0x91   :  { %150 = vmatmul.msk.f32.vlgmr.msra.gmra.mxu2 %vm82_vm1, %v71_v21 }
 0x108   :  { %v106_v23 = vpop.f32.mrf.mxu1 }
 0x109   :  { %v112_v24 = vadd.f32 %v106_v23, %v72_v22 }
 0x10b   :  { %114 = vst.msk [vmem:[#allocation2] sm:$0xff] %vm27_vm0, %v112_v24 }
 0x112   :  { %v119_v27 = vld [vmem:[#allocation2] sm:$0xff] }
 0x113   :  { %v125_v28 = vadd.f32 %v168_v25, %v119_v27 }
 0x114   :  { %v109_v29 = vpop.f32.mrf.mxu2 }
 0x115   :  { %v113_v30 = vadd.f32 %v109_v29, %v73_v26  ;;  %127 = vst.msk [vmem:[#allocation5] sm:$0xff] %vm27_vm0, %v125_v28 }
 0x117   :  { %115 = vst.msk [vmem:[#allocation2 + $0x8] sm:$0xff] %vm27_vm0, %v113_v30 }
 0x11e   :  { %v120_v31 = vld [vmem:[#allocation2 + $0x8] sm:$0xff] }
 0x11f   :  { %v126_v32 = vadd.f32 %v168_v25, %v120_v31 }
 0x121   :  { %128 = vst.msk [vmem:[#allocation5 + $0x8] sm:$0xff] %vm27_vm0, %v126_v32 }
 0x122   :  { %141 = dma.vmem_to_hbm [thread:$0]  %s134_s24, 256, %s136_s27, [#allocation6], %s197_s5, %s197_s5, %s198_s28  }
 0x123   :  { %193 = dma.done.wait [#allocation6], 256  }
 0x124   :  { %194 = vsyncadd [#allocation6], 4294967040 }
 0x125   :  { %146 = vsyncpa [#allocation6], 1 }

</bundles_post_ra>
